<compile_context>
chip_gen: v7x
topology: tpu7x:2x2x1
jax: 0.10.0
libtpu: 0.0.40
codegen_flags: <defaults>
</compile_context>

<pallas_src>
import numpy as np
import jax
import jax.numpy as jnp
from jax.experimental import pallas as pl
from jax.experimental.pallas import tpu as pltpu


def _make_ddim_kernel(use_noise: bool, c_in: int, c_out: int):
    """Build the fused multi-step DDIM kernel body."""

    def kernel(*refs):
        if use_noise:
            (coef_ref, x0_ref, prevs_ref, subseq_ref,
             wxT_ref, wpT_ref, wsT_ref, b_ref, noise_ref,
             out_ref, static_ref) = refs
        else:
            (coef_ref, x0_ref, prevs_ref, subseq_ref,
             wxT_ref, wpT_ref, wsT_ref, b_ref,
             out_ref, static_ref) = refs

        s = pl.program_id(1)  # step axis (innermost, "arbitrary")

        @pl.when(s == 0)
        def _init():
            # x becomes resident in the (revisited) output VMEM block.
            out_ref[...] = x0_ref[...]
            # Loop-invariant denoiser contribution: prevs/subseq channels + bias.
            prevs = prevs_ref[...]
            subseq = subseq_ref[...]
            acc = wpT_ref[:, 0:1] * prevs[0:1, :]
            for k in range(1, c_in):
                acc = acc + wpT_ref[:, k:k + 1] * prevs[k:k + 1, :]
            for k in range(c_in):
                acc = acc + wsT_ref[:, k:k + 1] * subseq[k:k + 1, :]
            static_ref[...] = acc + b_ref[...]

        x = out_ref[...]                               # (c_out, TM), resident
        # Per-step denoiser: x-channel contribution only (VPU broadcast FMAs).
        nh = static_ref[...]
        for k in range(c_out):
            nh = nh + wxT_ref[:, k:k + 1] * x[k:k + 1, :]
        nh = nh * coef_ref[s, 3]                       # synthetic time scale

        # Folded DDIM update: x <- A*x + Bc*noise_hat (+ sigma*noise)
        new_x = coef_ref[s, 0] * x + coef_ref[s, 1] * nh
        if use_noise:
            new_x = new_x + coef_ref[s, 2] * noise_ref[0]
        out_ref[...] = new_x

    return kernel


def _choose_tile(m: int, cap: int = 32768) -> int:
    """Largest multiple-of-128 divisor of m not exceeding cap (else m)."""
    if m <= cap:
        return m
    t = cap - cap % 128
    while t >= 128:
        if m % t == 0:
            return t
        t -= 128
    return m


def ddim_sample_fused(coef, x0_f, prevs_f, subseq_f, wxT, wpT, wsT, b_col,
                      noise_f=None):
    """Run all DDIM steps inside one pallas_call.

    coef:     f32[num_steps, 4] per-step scalars (A, Bc, sigma, t_scale) in SMEM
    x0_f:     f32[3, M]   initial noise sample (channels-first, lane-dense)
    prevs_f:  f32[C, M]   previous frames
    subseq_f: f32[C, M]   subsequent frames
    wxT/wpT/wsT: transposed 1x1-conv weight slices (3, 3) / (3, C) / (3, C)
    b_col:    f32[3, 1]   bias
    noise_f:  optional f32[num_steps, 3, M] per-step noise (eta > 0 only)
    """
    c_out, M = x0_f.shape
    c_in = prevs_f.shape[0]
    num_steps = coef.shape[0]
    TM = _choose_tile(M)
    grid = (M // TM, num_steps)

    smem = pltpu.MemorySpace.SMEM

    in_specs = [
        pl.BlockSpec(memory_space=smem),                        # coef table
        pl.BlockSpec((c_out, TM), lambda m, s: (0, m)),         # x init
        pl.BlockSpec((c_in, TM), lambda m, s: (0, m)),          # prevs
        pl.BlockSpec((c_in, TM), lambda m, s: (0, m)),          # subseq
        pl.BlockSpec((c_out, c_out), lambda m, s: (0, 0)),      # W^T (x rows)
        pl.BlockSpec((c_out, c_in), lambda m, s: (0, 0)),       # W^T (prevs rows)
        pl.BlockSpec((c_out, c_in), lambda m, s: (0, 0)),       # W^T (subseq rows)
        pl.BlockSpec((c_out, 1), lambda m, s: (0, 0)),          # bias
    ]
    args = [coef, x0_f, prevs_f, subseq_f, wxT, wpT, wsT, b_col]
    if noise_f is not None:
        in_specs.append(pl.BlockSpec((1, c_out, TM), lambda m, s: (s, 0, m)))
        args.append(noise_f)

    return pl.pallas_call(
        _make_ddim_kernel(noise_f is not None, c_in, c_out),
        out_shape=jax.ShapeDtypeStruct((c_out, M), jnp.float32),
        grid=grid,
        in_specs=in_specs,
        out_specs=pl.BlockSpec((c_out, TM), lambda m, s: (0, m)),
        scratch_shapes=[pltpu.VMEM((c_out, TM), jnp.float32)],
        compiler_params=pltpu.CompilerParams(
            dimension_semantics=("parallel", "arbitrary")),
    )(*args)


class SyntheticDenoiser:
    """Stand-in for the external diffusion model: 1x1 conv over concatenated
    channels with a scalar time scale.  Deterministic weights."""

    def __init__(self, n_steps, in_ch, out_ch=3, use_3d=False):
        self.n_steps = n_steps
        self.use_3d = use_3d
        self.out_ch = out_ch
        k = np.arange(in_ch * out_ch, dtype=np.float32).reshape(in_ch, out_ch)
        self.w = jnp.asarray(0.05 * np.sin(k), dtype=jnp.float32)        # (Cin, 3)
        self.b = jnp.asarray(0.01 * np.cos(np.arange(out_ch, dtype=np.float32)),
                             dtype=jnp.float32)[None, :]                  # (1, 3)


class DDIMSamplerPallas:
    """JAX/Pallas port of DDIMSampler (DDPM schedule buffers + DDIM update)."""

    def __init__(self, model):
        self.model = model
        self.n_steps = model.n_steps
        beta = np.linspace(0.0001, 0.02, self.n_steps, dtype=np.float64)
        self.beta = beta
        self.alpha = 1.0 - beta
        self.alpha_cumprod = np.cumprod(self.alpha)

    def _schedule(self, eta, num_steps):
        num_steps = num_steps or self.n_steps
        # matches torch.linspace(...).int(): truncation toward zero
        step_indices = np.linspace(0, self.n_steps - 1, num_steps).astype(np.int32)
        steps = list(reversed(step_indices.tolist()))
        coefs = np.zeros((num_steps, 4), dtype=np.float32)
        for i, step in enumerate(steps):
            prev_step = steps[i + 1] if i < len(steps) - 1 else -1
            ac = float(self.alpha_cumprod[step])
            ac_prev = float(self.alpha_cumprod[prev_step]) if prev_step >= 0 else 1.0
            sigma = eta * np.sqrt((1.0 - ac_prev) / (1.0 - ac)) * np.sqrt(
                max(1.0 - ac / ac_prev, 0.0))
            dir_coef = np.sqrt(max(1.0 - ac_prev - sigma ** 2, 0.0))
            a_coef = np.sqrt(ac_prev) / np.sqrt(ac)
            b_coef = dir_coef - np.sqrt(ac_prev) * np.sqrt(1.0 - ac) / np.sqrt(ac)
            t_scale = 1.0 + step / self.n_steps       # synthetic time embedding
            coefs[i] = (a_coef, b_coef, sigma, t_scale)
        return steps, coefs

    def __call__(self, prevs, subseq, key=None, eta=0.0, num_steps=None,
                 x_init=None, noise=None):
        B, C, H, W = prevs.shape
        c_out = 3
        M = B * H * W

        if x_init is None:
            key, sub = jax.random.split(key)
            x_init = jax.random.normal(sub, (B, c_out, H, W), dtype=jnp.float32)

        steps, coefs = self._schedule(eta, num_steps)
        ns = len(steps)

        def to_cm(a):  # NCHW -> (C, B*H*W): channels on sublanes, pixels on lanes
            return jnp.transpose(a, (1, 0, 2, 3)).reshape(a.shape[1], -1)

        prevs_f = to_cm(prevs)
        subseq_f = to_cm(subseq)
        x0_f = to_cm(x_init)

        # Split the 1x1-conv weight per input group (prevs | x | subseq), transposed.
        wT = jnp.transpose(self.model.w)              # (3, Cin)
        wpT = wT[:, :C]
        wxT = wT[:, C:C + c_out]
        wsT = wT[:, C + c_out:]
        b_col = jnp.reshape(self.model.b, (c_out, 1))

        noise_f = None
        if eta > 0.0:
            if noise is None:
                key, sub = jax.random.split(key)
                noise = jax.random.normal(sub, (ns, B, c_out, H, W),
                                          dtype=jnp.float32)
            noise_f = jnp.transpose(noise, (0, 2, 1, 3, 4)).reshape(ns, c_out, M)

        x_f = ddim_sample_fused(jnp.asarray(coefs), x0_f, prevs_f, subseq_f,
                                wxT, wpT, wsT, b_col, noise_f)

        return jnp.transpose(x_f.reshape(c_out, B, H, W), (1, 0, 2, 3))


def ddim_reference(model, alpha_cumprod, prevs, subseq, x_init, eta, num_steps,
                   n_steps, noise=None):
    """Pure-JAX (unfused, NCHW) reference mirroring the PyTorch module."""
    B, C, H, W = prevs.shape
    x = x_init
    step_indices = np.linspace(0, n_steps - 1, num_steps).astype(np.int32)
    steps = list(reversed(step_indices.tolist()))
    w, b = model.w, model.b
    for i, step in enumerate(steps):
        model_in = jnp.concatenate([prevs, x, subseq], axis=1)      # (B, 3C, H, W)
        mi = jnp.transpose(model_in, (0, 2, 3, 1)).reshape(-1, model_in.shape[1])
        nh = (jnp.matmul(mi, w, precision=jax.lax.Precision.HIGHEST) + b) \
            * (1.0 + step / n_steps)
        noise_hat = jnp.transpose(nh.reshape(B, H, W, 3), (0, 3, 1, 2))
        prev_step = steps[i + 1] if i < len(steps) - 1 else -1
        ac = float(alpha_cumprod[step])
        ac_prev = float(alpha_cumprod[prev_step]) if prev_step >= 0 else 1.0
        sigma = eta * np.sqrt((1.0 - ac_prev) / (1.0 - ac)) * np.sqrt(
            max(1.0 - ac / ac_prev, 0.0))
        dir_coef = np.sqrt(max(1.0 - ac_prev - sigma ** 2, 0.0))
        x0_t = (x - np.sqrt(1.0 - ac) * noise_hat) / np.sqrt(ac)
        if noise is not None and i < len(steps) - 1:
            step_noise = noise[i]
        else:
            step_noise = jnp.zeros_like(x)
        x = np.sqrt(ac_prev) * x0_t + dir_coef * noise_hat + sigma * step_noise
    return x


if __name__ == "__main__":
    B, C, H, W = 2, 3, 16, 16
    n_steps = 50
    num_steps = 10

    key = jax.random.PRNGKey(0)
    k1, k2, k3, k4 = jax.random.split(key, 4)
    prevs = jax.random.normal(k1, (B, C, H, W), dtype=jnp.float32)
    subseq = jax.random.normal(k2, (B, C, H, W), dtype=jnp.float32)
    x_init = jax.random.normal(k3, (B, 3, H, W), dtype=jnp.float32)

    model = SyntheticDenoiser(n_steps=n_steps, in_ch=C + 3 + C, out_ch=3)
    sampler = DDIMSamplerPallas(model)

    # Deterministic path (eta = 0): no noise input DMA'd at all.
    out = sampler(prevs, subseq, eta=0.0, num_steps=num_steps, x_init=x_init)
    out = jax.block_until_ready(out)
    assert out.shape == (B, 3, H, W) and out.dtype == jnp.float32
    assert bool(jnp.all(jnp.isfinite(out)))
    ref = ddim_reference(model, sampler.alpha_cumprod, prevs, subseq, x_init,
                         eta=0.0, num_steps=num_steps, n_steps=n_steps)
    np.testing.assert_allclose(np.asarray(out), np.asarray(ref),
                               rtol=2e-4, atol=2e-4)

    # Stochastic path (eta > 0) with shared pre-drawn per-step noise.
    noise = jax.random.normal(k4, (num_steps, B, 3, H, W), dtype=jnp.float32)
    out_s = sampler(prevs, subseq, eta=0.5, num_steps=num_steps,
                    x_init=x_init, noise=noise)
    out_s = jax.block_until_ready(out_s)
    assert bool(jnp.all(jnp.isfinite(out_s)))
    ref_s = ddim_reference(model, sampler.alpha_cumprod, prevs, subseq, x_init,
                           eta=0.5, num_steps=num_steps, n_steps=n_steps,
                           noise=noise)
    np.testing.assert_allclose(np.asarray(out_s), np.asarray(ref_s),
                               rtol=2e-4, atol=2e-4)

    print("KERNEL_OK")
</pallas_src>

<mosaic_0001>
module attributes {stable_mosaic.version = 11 : i64} {
  func.func @kernel(%arg0: i32, %arg1: i32, %arg2: memref<10x4xf32, #tpu.memory_space<smem>>, %arg3: memref<3x512xf32, #tpu.memory_space<vmem>>, %arg4: memref<3x512xf32, #tpu.memory_space<vmem>>, %arg5: memref<3x512xf32, #tpu.memory_space<vmem>>, %arg6: memref<3x3xf32, #tpu.memory_space<vmem>>, %arg7: memref<3x3xf32, #tpu.memory_space<vmem>>, %arg8: memref<3x3xf32, #tpu.memory_space<vmem>>, %arg9: memref<3x1xf32, #tpu.memory_space<vmem>>, %arg10: memref<3x512xf32, #tpu.memory_space<vmem>>, %arg11: memref<3x512xf32, #tpu.memory_space<vmem>>) attributes {dimension_semantics = [#tpu.dimension_semantics<parallel>, #tpu.dimension_semantics<arbitrary>], iteration_bounds = array<i64: 1, 10>, scalar_prefetch = 0 : i64, scratch_operands = 1 : i64, tpu.core_type = #tpu.core_type<tc>, window_params = [{transform_indices = @transform_0, window_bounds = array<i64: 10, 4>}, {transform_indices = @transform_1, window_bounds = array<i64: 3, 512>}, {transform_indices = @transform_2, window_bounds = array<i64: 3, 512>}, {transform_indices = @transform_3, window_bounds = array<i64: 3, 512>}, {pipeline_mode = #tpu.pipeline_mode<synchronous>, transform_indices = @transform_4, window_bounds = array<i64: 3, 3>}, {pipeline_mode = #tpu.pipeline_mode<synchronous>, transform_indices = @transform_5, window_bounds = array<i64: 3, 3>}, {pipeline_mode = #tpu.pipeline_mode<synchronous>, transform_indices = @transform_6, window_bounds = array<i64: 3, 3>}, {pipeline_mode = #tpu.pipeline_mode<synchronous>, transform_indices = @transform_7, window_bounds = array<i64: 3, 1>}, {transform_indices = @transform_8, window_bounds = array<i64: 3, 512>}]} {
    %c0_i32 = arith.constant 0 : i32
    %0 = arith.cmpi eq, %arg1, %c0_i32 : i32
    %1 = arith.extui %0 : i1 to i32
    %c0_i32_0 = arith.constant 0 : i32
    %2 = arith.cmpi ne, %1, %c0_i32_0 : i32
    scf.if %2 {
      %c0_12 = arith.constant 0 : index
      %c0_13 = arith.constant 0 : index
      %37 = vector.load %arg3[%c0_12, %c0_13] : memref<3x512xf32, #tpu.memory_space<vmem>>, vector<3x512xf32>
      %c0_14 = arith.constant 0 : index
      %c0_15 = arith.constant 0 : index
      %38 = vector.load %arg10[%c0_14, %c0_15] : memref<3x512xf32, #tpu.memory_space<vmem>>, vector<3x512xf32>
      tpu.vector_store %arg10[%c0_14, %c0_15], %37 {strides = array<i32>} : memref<3x512xf32, #tpu.memory_space<vmem>>, vector<3x512xf32>,
      %c0_16 = arith.constant 0 : index
      %c0_17 = arith.constant 0 : index
      %39 = vector.load %arg4[%c0_16, %c0_17] : memref<3x512xf32, #tpu.memory_space<vmem>>, vector<3x512xf32>
      %c0_18 = arith.constant 0 : index
      %c0_19 = arith.constant 0 : index
      %40 = vector.load %arg5[%c0_18, %c0_19] : memref<3x512xf32, #tpu.memory_space<vmem>>, vector<3x512xf32>
      %c0_20 = arith.constant 0 : index
      %c0_21 = arith.constant 0 : index
      %41 = vector.load %arg7[%c0_20, %c0_21] : memref<3x3xf32, #tpu.memory_space<vmem>>, vector<3x1xf32>
      %42 = vector.extract_strided_slice %39 {offsets = [0, 0], sizes = [1, 512], strides = [1, 1]} : vector<3x512xf32> to vector<1x512xf32>
      %43 = vector.broadcast %41 : vector<3x1xf32> to vector<3x512xf32>
      %44 = vector.broadcast %42 : vector<1x512xf32> to vector<3x512xf32>
      %45 = arith.mulf %43, %44 : vector<3x512xf32>
      %c0_22 = arith.constant 0 : index
      %c1_23 = arith.constant 1 : index
      %46 = vector.load %arg7[%c0_22, %c1_23] : memref<3x3xf32, #tpu.memory_space<vmem>>, vector<3x1xf32>
      %47 = vector.extract_strided_slice %39 {offsets = [1, 0], sizes = [1, 512], strides = [1, 1]} : vector<3x512xf32> to vector<1x512xf32>
      %48 = vector.broadcast %46 : vector<3x1xf32> to vector<3x512xf32>
      %49 = vector.broadcast %47 : vector<1x512xf32> to vector<3x512xf32>
      %50 = arith.mulf %48, %49 : vector<3x512xf32>
      %51 = arith.addf %45, %50 : vector<3x512xf32>
      %c0_24 = arith.constant 0 : index
      %c2_25 = arith.constant 2 : index
      %52 = vector.load %arg7[%c0_24, %c2_25] : memref<3x3xf32, #tpu.memory_space<vmem>>, vector<3x1xf32>
      %53 = vector.extract_strided_slice %39 {offsets = [2, 0], sizes = [1, 512], strides = [1, 1]} : vector<3x512xf32> to vector<1x512xf32>
      %54 = vector.broadcast %52 : vector<3x1xf32> to vector<3x512xf32>
      %55 = vector.broadcast %53 : vector<1x512xf32> to vector<3x512xf32>
      %56 = arith.mulf %54, %55 : vector<3x512xf32>
      %57 = arith.addf %51, %56 : vector<3x512xf32>
      %c0_26 = arith.constant 0 : index
      %c0_27 = arith.constant 0 : index
      %58 = vector.load %arg8[%c0_26, %c0_27] : memref<3x3xf32, #tpu.memory_space<vmem>>, vector<3x1xf32>
      %59 = vector.extract_strided_slice %40 {offsets = [0, 0], sizes = [1, 512], strides = [1, 1]} : vector<3x512xf32> to vector<1x512xf32>
      %60 = vector.broadcast %58 : vector<3x1xf32> to vector<3x512xf32>
      %61 = vector.broadcast %59 : vector<1x512xf32> to vector<3x512xf32>
      %62 = arith.mulf %60, %61 : vector<3x512xf32>
      %63 = arith.addf %57, %62 : vector<3x512xf32>
      %c0_28 = arith.constant 0 : index
      %c1_29 = arith.constant 1 : index
      %64 = vector.load %arg8[%c0_28, %c1_29] : memref<3x3xf32, #tpu.memory_space<vmem>>, vector<3x1xf32>
      %65 = vector.extract_strided_slice %40 {offsets = [1, 0], sizes = [1, 512], strides = [1, 1]} : vector<3x512xf32> to vector<1x512xf32>
      %66 = vector.broadcast %64 : vector<3x1xf32> to vector<3x512xf32>
      %67 = vector.broadcast %65 : vector<1x512xf32> to vector<3x512xf32>
      %68 = arith.mulf %66, %67 : vector<3x512xf32>
      %69 = arith.addf %63, %68 : vector<3x512xf32>
      %c0_30 = arith.constant 0 : index
      %c2_31 = arith.constant 2 : index
      %70 = vector.load %arg8[%c0_30, %c2_31] : memref<3x3xf32, #tpu.memory_space<vmem>>, vector<3x1xf32>
      %71 = vector.extract_strided_slice %40 {offsets = [2, 0], sizes = [1, 512], strides = [1, 1]} : vector<3x512xf32> to vector<1x512xf32>
      %72 = vector.broadcast %70 : vector<3x1xf32> to vector<3x512xf32>
      %73 = vector.broadcast %71 : vector<1x512xf32> to vector<3x512xf32>
      %74 = arith.mulf %72, %73 : vector<3x512xf32>
      %75 = arith.addf %69, %74 : vector<3x512xf32>
      %c0_32 = arith.constant 0 : index
      %c0_33 = arith.constant 0 : index
      %76 = vector.load %arg9[%c0_32, %c0_33] : memref<3x1xf32, #tpu.memory_space<vmem>>, vector<3x1xf32>
      %77 = vector.broadcast %76 : vector<3x1xf32> to vector<3x512xf32>
      %78 = arith.addf %75, %77 : vector<3x512xf32>
      %c0_34 = arith.constant 0 : index
      %c0_35 = arith.constant 0 : index
      %79 = vector.load %arg11[%c0_34, %c0_35] : memref<3x512xf32, #tpu.memory_space<vmem>>, vector<3x512xf32>
      tpu.vector_store %arg11[%c0_34, %c0_35], %78 {strides = array<i32>} : memref<3x512xf32, #tpu.memory_space<vmem>>, vector<3x512xf32>,
    } else {
    }
    %c0 = arith.constant 0 : index
    %c0_1 = arith.constant 0 : index
    %3 = vector.load %arg10[%c0, %c0_1] : memref<3x512xf32, #tpu.memory_space<vmem>>, vector<3x512xf32>
    %c0_2 = arith.constant 0 : index
    %c0_3 = arith.constant 0 : index
    %4 = vector.load %arg11[%c0_2, %c0_3] : memref<3x512xf32, #tpu.memory_space<vmem>>, vector<3x512xf32>
    %c0_4 = arith.constant 0 : index
    %c0_5 = arith.constant 0 : index
    %5 = vector.load %arg6[%c0_4, %c0_5] : memref<3x3xf32, #tpu.memory_space<vmem>>, vector<3x1xf32>
    %6 = vector.extract_strided_slice %3 {offsets = [0, 0], sizes = [1, 512], strides = [1, 1]} : vector<3x512xf32> to vector<1x512xf32>
    %7 = vector.broadcast %5 : vector<3x1xf32> to vector<3x512xf32>
    %8 = vector.broadcast %6 : vector<1x512xf32> to vector<3x512xf32>
    %9 = arith.mulf %7, %8 : vector<3x512xf32>
    %10 = arith.addf %4, %9 : vector<3x512xf32>
    %c0_6 = arith.constant 0 : index
    %c1 = arith.constant 1 : index
    %11 = vector.load %arg6[%c0_6, %c1] : memref<3x3xf32, #tpu.memory_space<vmem>>, vector<3x1xf32>
    %12 = vector.extract_strided_slice %3 {offsets = [1, 0], sizes = [1, 512], strides = [1, 1]} : vector<3x512xf32> to vector<1x512xf32>
    %13 = vector.broadcast %11 : vector<3x1xf32> to vector<3x512xf32>
    %14 = vector.broadcast %12 : vector<1x512xf32> to vector<3x512xf32>
    %15 = arith.mulf %13, %14 : vector<3x512xf32>
    %16 = arith.addf %10, %15 : vector<3x512xf32>
    %c0_7 = arith.constant 0 : index
    %c2 = arith.constant 2 : index
    %17 = vector.load %arg6[%c0_7, %c2] : memref<3x3xf32, #tpu.memory_space<vmem>>, vector<3x1xf32>
    %18 = vector.extract_strided_slice %3 {offsets = [2, 0], sizes = [1, 512], strides = [1, 1]} : vector<3x512xf32> to vector<1x512xf32>
    %19 = vector.broadcast %17 : vector<3x1xf32> to vector<3x512xf32>
    %20 = vector.broadcast %18 : vector<1x512xf32> to vector<3x512xf32>
    %21 = arith.mulf %19, %20 : vector<3x512xf32>
    %22 = arith.addf %16, %21 : vector<3x512xf32>
    %23 = arith.index_cast %arg1 : i32 to index
    %c3 = arith.constant 3 : index
    %24 = memref.load %arg2[%23, %c3] : memref<10x4xf32, #tpu.memory_space<smem>>
    %25 = vector.broadcast %24 : f32 to vector<3x512xf32>
    %26 = arith.mulf %22, %25 : vector<3x512xf32>
    %27 = arith.index_cast %arg1 : i32 to index
    %c0_8 = arith.constant 0 : index
    %28 = memref.load %arg2[%27, %c0_8] : memref<10x4xf32, #tpu.memory_space<smem>>
    %29 = vector.broadcast %28 : f32 to vector<3x512xf32>
    %30 = arith.mulf %29, %3 : vector<3x512xf32>
    %31 = arith.index_cast %arg1 : i32 to index
    %c1_9 = arith.constant 1 : index
    %32 = memref.load %arg2[%31, %c1_9] : memref<10x4xf32, #tpu.memory_space<smem>>
    %33 = vector.broadcast %32 : f32 to vector<3x512xf32>
    %34 = arith.mulf %33, %26 : vector<3x512xf32>
    %35 = arith.addf %30, %34 : vector<3x512xf32>
    %c0_10 = arith.constant 0 : index
    %c0_11 = arith.constant 0 : index
    %36 = vector.load %arg10[%c0_10, %c0_11] : memref<3x512xf32, #tpu.memory_space<vmem>>, vector<3x512xf32>
    tpu.vector_store %arg10[%c0_10, %c0_11], %35 {strides = array<i32>} : memref<3x512xf32, #tpu.memory_space<vmem>>, vector<3x512xf32>,
    return
  }
  func.func @transform_0(%arg0: i32, %arg1: i32) -> (i32, i32) {
    %c0_i32 = arith.constant 0 : i32
    %c0_i32_0 = arith.constant 0 : i32
    %c0_i32_1 = arith.constant 0 : i32
    return %c0_i32, %c0_i32_0 : i32, i32
  }
  func.func @transform_1(%arg0: i32, %arg1: i32) -> (i32, i32) {
    %c0_i32 = arith.constant 0 : i32
    %c0_i32_0 = arith.constant 0 : i32
    return %c0_i32, %arg0 : i32, i32
  }
  func.func @transform_2(%arg0: i32, %arg1: i32) -> (i32, i32) {
    %c0_i32 = arith.constant 0 : i32
    %c0_i32_0 = arith.constant 0 : i32
    return %c0_i32, %arg0 : i32, i32
  }
  func.func @transform_3(%arg0: i32, %arg1: i32) -> (i32, i32) {
    %c0_i32 = arith.constant 0 : i32
    %c0_i32_0 = arith.constant 0 : i32
    return %c0_i32, %arg0 : i32, i32
  }
  func.func @transform_4(%arg0: i32, %arg1: i32) -> (i32, i32) {
    %c0_i32 = arith.constant 0 : i32
    %c0_i32_0 = arith.constant 0 : i32
    %c0_i32_1 = arith.constant 0 : i32
    return %c0_i32, %c0_i32_0 : i32, i32
  }
  func.func @transform_5(%arg0: i32, %arg1: i32) -> (i32, i32) {
    %c0_i32 = arith.constant 0 : i32
    %c0_i32_0 = arith.constant 0 : i32
    %c0_i32_1 = arith.constant 0 : i32
    return %c0_i32, %c0_i32_0 : i32, i32
  }
  func.func @transform_6(%arg0: i32, %arg1: i32) -> (i32, i32) {
    %c0_i32 = arith.constant 0 : i32
    %c0_i32_0 = arith.constant 0 : i32
    %c0_i32_1 = arith.constant 0 : i32
    return %c0_i32, %c0_i32_0 : i32, i32
  }
  func.func @transform_7(%arg0: i32, %arg1: i32) -> (i32, i32) {
    %c0_i32 = arith.constant 0 : i32
    %c0_i32_0 = arith.constant 0 : i32
    %c0_i32_1 = arith.constant 0 : i32
    return %c0_i32, %c0_i32_0 : i32, i32
  }
  func.func @transform_8(%arg0: i32, %arg1: i32) -> (i32, i32) {
    %c0_i32 = arith.constant 0 : i32
    %c0_i32_0 = arith.constant 0 : i32
    return %c0_i32, %arg0 : i32, i32
  }
}

</mosaic_0001>

<bundles_post_ra>
// kernel: tpu_custom_call.1
= control target key start
LH: loop header
LB: loop body
LE: loop exit
PB: predicated region body
PF: predicated region fallthrough
CT: control target
= control target key end

     0   :  { %13 = vsyncpa [#allocation6], 0  ;;  %s1419_s0 = inlined_call_operand.vmem [shape: f32[10,4], index: 0, kind: input, shape index: {}]   ;;  %s1420_s1 = inlined_call_operand.vmem [shape: f32[3,512], index: 1, kind: input, shape index: {}]   ;;  %s1421_s2 = inlined_call_operand.vmem [shape: f32[3,512], index: 2, kind: input, shape index: {}]   ;;  %s1422_s3 = inlined_call_operand.hbm [shape: f32[3,512], index: 3, kind: input, shape index: {}]   ;;  %s1423_s4 = inlined_call_operand.vmem [shape: f32[3,3], index: 4, kind: input, shape index: {}]   ;;  %s1424_s5 = inlined_call_operand.vmem [shape: f32[3,3], index: 5, kind: input, shape index: {}]   ;;  %s1425_s6 = inlined_call_operand.vmem [shape: f32[3,3], index: 6, kind: input, shape index: {}]   ;;  %s1426_s7 = inlined_call_operand.vmem [shape: f32[3,1], index: 7, kind: input, shape index: {}]   ;;  %s1427_s8 = inlined_call_operand.hbm [shape: f32[3,512], index: 8, kind: output, shape index: {}]  }
   0x1   :  { %14 = vsyncpa [#allocation4], 0 }
   0x2   :  { %15 = vsyncpa [#allocation5], 0  ;;  %s1241_s27 = smov 0   ;;  %s1243_s28 = smov 0  }
   0x3   :  { %s1245_s29 = smov 0  }
   0x4 LB: > { %s993_s30 = sadd.s32 4294967295, %s1183_s29   ;;  %s30_s9 = sadd.s32 1, %s1179_s28  ;;  %s1183_s29 = sphi %s1245_s29, %s21_s29   ;;  %s1179_s28 = sphi %s1243_s28, %s1433_s28   ;;  %s1175_s27 = sphi %s1241_s27, %s1432_s27  }
   0x5   : > { %p31_p0 = scmp.ge.s32.totalorder %s30_s9, 10  ;;  %p994_p1 = scmp.ge.s32.totalorder %s1183_s29, 1 }
   0x6   : > { %p247_p2 = scmp.lt.s32.totalorder %s1183_s29, 11  ;;  %p1268_p4 = scmp.eq.s32.totalorder %s993_s30, 0 }
   0x7   : > { %s1435_s9 = smov (%p31_p0, %s30_s9), 0  ;;  %s259_s14 = sshll.u32 %s1419_s0, 4  ;;  %s260_s14 = int_to_ptr.vmem [resolvable:$true] %s259_s14 }
   0x8   : > { %p1262_p3 = pnand %p994_p1, %p247_p2  ;;  %s1185_s16 = smov [#allocation7]  }
   0x9   : > { %s294_s17 = sshll.u32 %s1185_s16, 4  ;;  %s1080_s18 = scalar_lea.vmem %s260_s14, 256  ;;  %s1283_s17 = int_to_ptr.vmem [resolvable:$true] %s294_s17 }
   0xa   : > { %p1020_p5 = pneg %p1262_p3  ;;  %p1081_p7 = scmp.ne.s32.totalorder %s260_s14, %s1080_s18 }
   0xb   : > { %p1088_p11 = scmp.lt.s32.totalorder %s260_s14, %s260_s14  ;;  %p1089_p12 = scmp.lt.s32.totalorder %s1080_s18, %s1080_s18 }
   0xc   : > { %p1279_p6 = pnand %p1268_p4, %p1020_p5 }
   0xd   : > { %p1090_p13 = por %p1089_p12, %p1088_p11 }
   0xe   : > { %p1082_p8 = pneg %p1279_p6 }
  0x10   : > { %p1083_p9 = pnand %p1082_p8, %p1081_p7 }
  0x12   : > { %p1084_p10 = pneg %p1083_p9 }
  0x14   : > { %p1091_p0 = pnand %p1090_p13, %p1084_p10 }
  0x16   : > { %1094 = shalt.err (!%p1091_p0)
}
  0x17   : > { %s1186_s19 = smov [#allocation3]   ;;  %s1187_s20 = smov 128  }
  0x18   : > { %s1188_s21 = smov 8   ;;  %s1095_s24 = scalar_lea.hbm %s1422_s3, 256 }
  0x19   : > { %1023 = dma.vmem_to_smem (!%p1279_p6), %s260_s14, 256, %s1186_s19, [#allocation6], %s1187_s20, %s1187_s20, %s1188_s21  }
  0x1a   : > { %p1096_p1 = scmp.ne.s32.totalorder %s1422_s3, %s1095_s24  ;;  %p1102_p7 = scmp.lt.u32.totalorder %s1095_s24, %s1422_s3 }
  0x1c   : > { %p1098_p2 = pnand %p1096_p1, %p1082_p8 }
  0x1e   : > { %p1099_p5 = pneg %p1098_p2 }
  0x20   : > { %p1104_p9 = pnand %p1102_p7, %p1099_p5 }
  0x22   : > { %1107 = shalt.err (!%p1104_p9)
}
  0x23   : > { %s1108_s14 = scalar_lea.vmem %s1283_s17, 256  ;;  %p1116_p13 = scmp.lt.s32.totalorder %s1283_s17, %s1283_s17 }
  0x24   : > { %p1109_p10 = scmp.ne.s32.totalorder %s1283_s17, %s1108_s14  ;;  %p1117_p0 = scmp.lt.s32.totalorder %s1108_s14, %s1108_s14 }
  0x26   : > { %p1111_p11 = pnand %p1109_p10, %p1082_p8  ;;  %p1118_p1 = por %p1117_p0, %p1116_p13 }
  0x28   : > { %p1112_p12 = pneg %p1111_p11 }
  0x2a   : > { %p1119_p2 = pnand %p1118_p1, %p1112_p12 }
  0x2c   : > { %1122 = shalt.err (!%p1119_p2)
}
  0x2d   : > { %1026 = dma.hbm_to_vmem [thread:$0]  (!%p1279_p6), %s1422_s3, 256, %s1283_s17, [#allocation4]  }
  0x2e   : > { %319 = sbr.rel (%p1262_p3) target bundleno = 375 (0x177), region = 52 }
  0x35   : > { %1162 = dma.done.wait (%p1268_p4), [#allocation6], 256  }
  0x36   : > { %1164 = vsyncadd (%p1268_p4), [#allocation6], 4294967040 }
  0x37   : > { %1166 = dma.done.wait (%p1268_p4), [#allocation4], 256  }
  0x38   : > { %1168 = vsyncadd (%p1268_p4), [#allocation4], 4294967040 }
  0x39   : > { %329 = sfence }
  0x3a   : > { %p1002_p8 = scmp.ne.s32.totalorder %s1175_s27, 0 }
  0x3b   : > { %v384_v0 = vld [vmem:[%s1424_s5] sm:$0x7] (!%p1002_p8)  ;;  %v1189_v1 = vmov (!%p1002_p8), 0   ;;  %v1190_v2 = vmov (!%p1002_p8), 2   ;;  %v1191_v4 = vmov (!%p1002_p8), 1   ;;  %v392_v8 = vlaneseq (!%p1002_p8) }
  0x3c   : > { %375 = sbr.rel (%p1002_p8) target bundleno = 211 (0xd3), region = 64  ;;  %1068 = vset.pattern.permute.xlu0 (!%p1002_p8), %v1189_v1  ;;  %1070 = vset.pattern.permute.xlu1 (!%p1002_p8), %v1190_v2  ;;  %v528_v3 = vld [vmem:[%s1425_s6] sm:$0x7] (!%p1002_p8)  ;;  %v377_v7 = vld [vmem:[%s1420_s1 + $0x8] sm:$0x77] (!%p1002_p8) }
  0x3d   : > { %387 = vperm.xlu0 (!%p1002_p8), %1068, %v384_v0   ;;  %481 = vperm.xlu1 (!%p1002_p8), %1070, %v384_v0   ;;  %v676_v5 = vld [vmem:[%s1426_s7] sm:$0x7] (!%p1002_p8)  ;;  %379 = vst [vmem:[#allocation8 + $0x8] sm:$0x77] (!%p1002_p8), %v377_v7  ;;  %v393_v9 = vshrl.u32 (!%p1002_p8), %v392_v8, 7 }
  0x3e   : > { %v376_v6 = vld [vmem:[%s1420_s1] sm:$0x77] (!%p1002_p8)  ;;  %v381_v14 = vld [vmem:[%s1421_s2 + $0x8] sm:$0x77] (!%p1002_p8)  ;;  %v382_v30 = vld [vmem:[#allocation7] sm:$0x77] (!%p1002_p8) }
  0x3f   : > { %378 = vst [vmem:[#allocation8] sm:$0x77] (!%p1002_p8), %v376_v6  ;;  %v394_v10 = vsub.s32 (!%p1002_p8), 0, %v393_v9  ;;  %v398_v11 = vsub.s32 (!%p1002_p8), 4, %v393_v9  ;;  %v486_v12 = vsub.s32 (!%p1002_p8), 2, %v393_v9  ;;  %v490_v15 = vsub.s32 (!%p1002_p8), 6, %v393_v9 }
  0x40   : > { %v380_v13 = vld [vmem:[%s1421_s2] sm:$0x77] (!%p1002_p8)  ;;  %v438_v20 = vsub.s32 (!%p1002_p8), 1, %v393_v9  ;;  %v442_v25 = vsub.s32 (!%p1002_p8), 5, %v393_v9  ;;  %v383_v31 = vld [vmem:[#allocation7 + $0x8] sm:$0x77] (!%p1002_p8) }
  0x41   : > { %1069 = vset.pattern.permute.xlu0 (!%p1002_p8), %v1191_v4  ;;  %1071 = vset.pattern.permute.xlu1 (!%p1002_p8), %v1189_v1  ;;  %v395_v16 = vrot.slane (!%p1002_p8), %v380_v13, %v394_v10  ;;  %v399_v17 = vrot.slane (!%p1002_p8), %v380_v13, %v398_v11  ;;  %v403_v18 = vrot.slane (!%p1002_p8), %v381_v14, %v394_v10 }
  0x42   : > { %433 = vperm.xlu0 (!%p1002_p8), %1069, %v384_v0   ;;  %531 = vperm.xlu1 (!%p1002_p8), %1071, %v528_v3   ;;  %v407_v19 = vrot.slane (!%p1002_p8), %v381_v14, %v398_v11  ;;  %v487_v21 = vrot.slane (!%p1002_p8), %v380_v13, %v486_v12  ;;  %v491_v22 = vrot.slane (!%p1002_p8), %v380_v13, %v490_v15 }
  0x43   : > { %v495_v23 = vrot.slane %v381_v14, %v486_v12  ;;  %v499_v24 = vrot.slane %v381_v14, %v490_v15  ;;  %v415_v26 = vrot.slane %v395_v16, %v394_v10  ;;  %v419_v27 = vrot.slane %v399_v17, %v394_v10 }
  0x44   : > { %v423_v28 = vrot.slane %v403_v18, %v394_v10  ;;  %v427_v29 = vrot.slane %v407_v19, %v394_v10  ;;  %v507_v32 = vrot.slane %v487_v21, %v486_v12  ;;  %v511_v33 = vrot.slane %v491_v22, %v486_v12 }
  0x45   : > { %v515_v34 = vrot.slane %v495_v23, %v486_v12  ;;  %v439_v35 = vrot.slane %v380_v13, %v438_v20  ;;  %v519_v36 = vrot.slane %v499_v24, %v486_v12  ;;  %v443_v37 = vrot.slane %v380_v13, %v442_v25 }
  0x46   : > { %1072 = vset.pattern.permute.xlu1 %v1191_v4  ;;  %1073 = vset.pattern.permute.xlu0 %v1190_v2  ;;  %v447_v38 = vrot.slane %v381_v14, %v438_v20  ;;  %v451_v39 = vrot.slane %v381_v14, %v442_v25  ;;  %v539_v40 = vrot.slane %v382_v30, %v394_v10 }
  0x47   : > { %581 = vperm.xlu1 %1072, %v528_v3   ;;  %629 = vperm.xlu0 %1073, %v528_v3   ;;  %v543_v41 = vrot.slane %v382_v30, %v398_v11  ;;  %v547_v42 = vrot.slane %v383_v31, %v394_v10  ;;  %v551_v43 = vrot.slane %v383_v31, %v398_v11 }
  0x48   : > { %v587_v44 = vrot.slane %v382_v30, %v438_v20  ;;  %v591_v45 = vrot.slane %v382_v30, %v442_v25  ;;  %v595_v46 = vrot.slane %v383_v31, %v438_v20  ;;  %v599_v47 = vrot.slane %v383_v31, %v442_v25 }
  0x49   : > { %v635_v50 = vrot.slane %v382_v30, %v486_v12  ;;  %v639_v51 = vrot.slane %v382_v30, %v490_v15  ;;  %v643_v52 = vrot.slane %v383_v31, %v486_v12  ;;  %v647_v53 = vrot.slane %v383_v31, %v490_v15 }
  0x4a   : > { %v459_v54 = vrot.slane %v439_v35, %v438_v20  ;;  %v463_v55 = vrot.slane %v443_v37, %v438_v20  ;;  %v467_v56 = vrot.slane %v447_v38, %v438_v20  ;;  %v471_v57 = vrot.slane %v451_v39, %v438_v20 }
  0x4b   : > { %1074 = vset.pattern.permute.xlu1 %v1189_v1  ;;  %1075 = vset.pattern.permute.xlu0 %v1189_v1  ;;  %v559_v58 = vrot.slane %v539_v40, %v394_v10  ;;  %v563_v59 = vrot.slane %v543_v41, %v394_v10  ;;  %v567_v60 = vrot.slane %v547_v42, %v394_v10 }
  0x4c   : > { %679 = vperm.xlu1 %1074, %v676_v5   ;;  %v571_v61 = vrot.slane %v551_v43, %v394_v10  ;;  %v607_v62 = vrot.slane %v587_v44, %v438_v20  ;;  %v611_v63 = vrot.slane %v591_v45, %v438_v20  ;;  %v615_v0 = vrot.slane %v595_v46, %v438_v20 }
  0x4d   : > { %v619_v1 = vrot.slane %v599_v47, %v438_v20  ;;  %v655_v2 = vrot.slane %v635_v50, %v486_v12  ;;  %v659_v3 = vrot.slane %v639_v51, %v486_v12  ;;  %v663_v4 = vrot.slane %v643_v52, %v486_v12 }
  0x4e   : > { %v667_v5 = vrot.slane %v647_v53, %v486_v12 }
  0xbc   : > { %v388_v48 = vpop.permute.xlu0 %387  ;;  %v482_v49 = vpop.permute.xlu1 %481 }
  0xbd   : > { %v428_v6 = vmul.f32 %v415_v26, %v388_v48  ;;  %v429_v7 = vmul.f32 %v419_v27, %v388_v48  ;;  %v430_v8 = vmul.f32 %v423_v28, %v388_v48  ;;  %v431_v9 = vmul.f32 %v427_v29, %v388_v48 }
  0xbe   : > { %v520_v18 = vmul.f32 %v507_v32, %v482_v49  ;;  %v521_v10 = vmul.f32 %v511_v33, %v482_v49  ;;  %v522_v19 = vmul.f32 %v515_v34, %v482_v49  ;;  %v523_v21 = vmul.f32 %v519_v36, %v482_v49 }
  0xc1   : > { %v434_v11 = vpop.permute.xlu0 %433  ;;  %v532_v13 = vpop.permute.xlu1 %531 }
  0xc2   : > { %v472_v14 = vmul.f32 %v459_v54, %v434_v11  ;;  %v473_v15 = vmul.f32 %v463_v55, %v434_v11  ;;  %v474_v16 = vmul.f32 %v467_v56, %v434_v11  ;;  %v475_v17 = vmul.f32 %v471_v57, %v434_v11 }
  0xc3   : > { %v572_v25 = vmul.f32 %v559_v58, %v532_v13  ;;  %v573_v12 = vmul.f32 %v563_v59, %v532_v13  ;;  %v574_v26 = vmul.f32 %v567_v60, %v532_v13  ;;  %v575_v27 = vmul.f32 %v571_v61, %v532_v13 }
  0xc4   : > { %v476_v22 = vadd.f32 %v472_v14, %v428_v6  ;;  %v477_v20 = vadd.f32 %v473_v15, %v429_v7  ;;  %v478_v23 = vadd.f32 %v474_v16, %v430_v8  ;;  %v479_v24 = vadd.f32 %v475_v17, %v431_v9 }
  0xc6   : > { %v524_v28 = vadd.f32 %v520_v18, %v476_v22  ;;  %v525_v29 = vadd.f32 %v521_v10, %v477_v20  ;;  %v526_v30 = vadd.f32 %v522_v19, %v478_v23  ;;  %v527_v31 = vadd.f32 %v523_v21, %v479_v24  ;;  %v582_v35 = vpop.permute.xlu1 %581  ;;  %v630_v37 = vpop.permute.xlu0 %629 }
  0xc7   : > { %v620_v38 = vmul.f32 %v607_v62, %v582_v35  ;;  %v621_v39 = vmul.f32 %v611_v63, %v582_v35  ;;  %v622_v32 = vmul.f32 %v615_v0, %v582_v35  ;;  %v623_v33 = vmul.f32 %v619_v1, %v582_v35 }
  0xc8   : > { %v576_v34 = vadd.f32 %v572_v25, %v524_v28  ;;  %v577_v36 = vadd.f32 %v573_v12, %v525_v29  ;;  %v578_v40 = vadd.f32 %v574_v26, %v526_v30  ;;  %v579_v41 = vadd.f32 %v575_v27, %v527_v31 }
  0xc9   : > { %v668_v42 = vmul.f32 %v655_v2, %v630_v37  ;;  %v669_v43 = vmul.f32 %v659_v3, %v630_v37  ;;  %v670_v44 = vmul.f32 %v663_v4, %v630_v37  ;;  %v671_v45 = vmul.f32 %v667_v5, %v630_v37 }
  0xca   : > { %v624_v46 = vadd.f32 %v620_v38, %v576_v34  ;;  %v625_v47 = vadd.f32 %v621_v39, %v577_v36  ;;  %v626_v48 = vadd.f32 %v622_v32, %v578_v40  ;;  %v627_v49 = vadd.f32 %v623_v33, %v579_v41 }
  0xcb   : > { %v680_v50 = vpop.permute.xlu1 %679 }
  0xcc   : > { %v672_v51 = vadd.f32 %v668_v42, %v624_v46  ;;  %v673_v52 = vadd.f32 %v669_v43, %v625_v47  ;;  %v674_v53 = vadd.f32 %v670_v44, %v626_v48  ;;  %v675_v54 = vadd.f32 %v671_v45, %v627_v49 }
  0xce   : > { %v682_v55 = vadd.f32 %v680_v50, %v672_v51  ;;  %v683_v56 = vadd.f32 %v680_v50, %v673_v52  ;;  %v684_v57 = vadd.f32 %v680_v50, %v674_v53  ;;  %v685_v58 = vadd.f32 %v680_v50, %v675_v54 }
  0xd0   : > { %v690_v59 = vcombine.low %v682_v55, %v683_v56  ;;  %v691_v60 = vcombine.low %v684_v57, %v685_v58 }
  0xd2   : > { %694 = vst [vmem:[#allocation2] sm:$0x77] %v690_v59  ;;  %695 = vst [vmem:[#allocation2 + $0x8] sm:$0x77] %v691_v60 }
  0xd3 PF: > { %v700_v61 = vld [vmem:[%s1423_s4] sm:$0x7]  ;;  %v1192_v62 = vmov 0   ;;  %v1193_v0 = vmov 2   ;;  %v1194_v2 = vmov 1   ;;  %v708_v3 = vlaneseq  ;;  %s1371_s19 = sshll.u32 %s1175_s27, 7 }
  0xd4   : > { %1076 = vset.pattern.permute.xlu0 %v1192_v62  ;;  %v814_v63 = vld [vmem:[%s1423_s4] sm:$0x7]  ;;  %1078 = vset.pattern.permute.xlu1 %v1193_v0  ;;  %v1360_v8 = vld [vmem:[#allocation8 + $0x8] sm:$0x77]  ;;  %s871_s11 = sadd.s32 3, %s1371_s19  ;;  %s880_s27 = sadd.s32 1, %s1371_s19 }
  0xd5   : > { %703 = vperm.xlu0 %1076, %v700_v61   ;;  %817 = vperm.xlu1 %1078, %v814_v63   ;;  %v758_v1 = vld [vmem:[%s1423_s4] sm:$0x7]  ;;  %v709_v4 = vshrl.u32 %v708_v3, 7  ;;  %s872_s20 = sld [smem:[#allocation3 + %s871_s11]]  ;;  %s1195_s23 = smov [#allocation8]  }
  0xd6   : > { %v1358_v7 = vld [vmem:[#allocation8] sm:$0x77]  ;;  %s876_s21 = sld [smem:[#allocation3 + %s1371_s19]]  ;;  %s899_s24 = sshll.u32 %s1195_s23, 4  ;;  %s900_s24 = int_to_ptr.vmem [resolvable:$true] %s899_s24 }
  0xd7   : > { %v710_v5 = vsub.s32 0, %v709_v4  ;;  %v714_v6 = vsub.s32 4, %v709_v4  ;;  %v822_v9 = vsub.s32 2, %v709_v4  ;;  %v826_v11 = vsub.s32 6, %v709_v4  ;;  %s881_s22 = sld [smem:[#allocation3 + %s880_s27]]  ;;  %p1384_p3 = scmp.eq.s32.totalorder %s993_s30, 9 }
  0xd8   : > { %v766_v17 = vsub.s32 1, %v709_v4  ;;  %v770_v18 = vsub.s32 5, %v709_v4  ;;  %s1123_s26 = scalar_lea.vmem %s900_s24, 256  ;;  %p1130_p7 = scmp.lt.s32.totalorder %s900_s24, %s900_s24 }
  0xd9   : > { %1077 = vset.pattern.permute.xlu0 %v1194_v2  ;;  %v711_v13 = vrot.slane %v1358_v7, %v710_v5  ;;  %v715_v14 = vrot.slane %v1358_v7, %v714_v6  ;;  %v719_v15 = vrot.slane %v1360_v8, %v710_v5  ;;  %v723_v16 = vrot.slane %v1360_v8, %v714_v6  ;;  %v698_v50 = vld [vmem:[#allocation2] sm:$0x77]  ;;  %v699_v51 = vld [vmem:[#allocation2 + $0x8] sm:$0x77]  ;;  %p1124_p4 = scmp.ne.s32.totalorder %s900_s24, %s1123_s26  ;;  %p1131_p9 = scmp.lt.s32.totalorder %s1123_s26, %s1123_s26 }
  0xda   : > { %761 = vperm.xlu0 %1077, %v758_v1   ;;  %v823_v10 = vrot.slane %v1358_v7, %v822_v9  ;;  %v827_v19 = vrot.slane %v1358_v7, %v826_v11  ;;  %v831_v21 = vrot.slane %v1360_v8, %v822_v9  ;;  %v835_v22 = vrot.slane %v1360_v8, %v826_v11 }
  0xdb   : > { %v731_v20 = vrot.slane %v711_v13, %v710_v5  ;;  %v735_v23 = vrot.slane %v715_v14, %v710_v5  ;;  %v739_v24 = vrot.slane %v719_v15, %v710_v5  ;;  %v743_v25 = vrot.slane %v723_v16, %v710_v5  ;;  %p1125_p6 = pnand %p1124_p4, %p1384_p3  ;;  %p1132_p10 = por %p1131_p9, %p1130_p7 }
  0xdc   : > { %v767_v12 = vrot.slane %v1358_v7, %v766_v17  ;;  %v771_v26 = vrot.slane %v1358_v7, %v770_v18  ;;  %v775_v27 = vrot.slane %v1360_v8, %v766_v17  ;;  %v779_v28 = vrot.slane %v1360_v8, %v770_v18 }
  0xdd   : > { %v843_v29 = vrot.slane %v823_v10, %v822_v9  ;;  %v847_v30 = vrot.slane %v827_v19, %v822_v9  ;;  %v851_v31 = vrot.slane %v831_v21, %v822_v9  ;;  %v855_v35 = vrot.slane %v835_v22, %v822_v9  ;;  %p1126_p5 = pneg %p1125_p6 }
  0xde   : > { %1079 = vset.pattern.permute.xlu0 %v1193_v0  ;;  %v787_v36 = vrot.slane %v767_v12, %v766_v17  ;;  %v791_v40 = vrot.slane %v771_v26, %v766_v17  ;;  %v795_v41 = vrot.slane %v775_v27, %v766_v17  ;;  %v799_v42 = vrot.slane %v779_v28, %v766_v17 }
  0xdf   : > { %v873_v0 = vstv %s872_s20  ;;  %v877_v1 = vstv %s876_s21  ;;  %v882_v4 = vstv %s881_s22  ;;  %p1133_p11 = pnand %p1132_p10, %p1126_p5 }
  0xe0   : > { %v878_v9 = vmul.f32 %v877_v1, %v1358_v7  ;;  %v879_v11 = vmul.f32 %v877_v1, %v1360_v8 }
 0x154   : > { %v704_v37 = vpop.permute.xlu0 %703  ;;  %v818_v34 = vpop.permute.xlu1 %817 }
 0x155   : > { %v744_v38 = vmul.f32 %v731_v20, %v704_v37  ;;  %v745_v39 = vmul.f32 %v735_v23, %v704_v37  ;;  %v746_v32 = vmul.f32 %v739_v24, %v704_v37  ;;  %v747_v33 = vmul.f32 %v743_v25, %v704_v37 }
 0x156   : > { %v856_v43 = vmul.f32 %v843_v29, %v818_v34  ;;  %v857_v44 = vmul.f32 %v847_v30, %v818_v34  ;;  %v858_v45 = vmul.f32 %v851_v31, %v818_v34  ;;  %v859_v46 = vmul.f32 %v855_v35, %v818_v34 }
 0x157   : > { %v752_v47 = vcombine.low %v744_v38, %v745_v39  ;;  %v753_v48 = vcombine.low %v746_v32, %v747_v33 }
 0x158   : > { %v864_v56 = vcombine.low %v856_v43, %v857_v44  ;;  %v865_v57 = vcombine.low %v858_v45, %v859_v46 }
 0x159   : > { %v762_v49 = vpop.permute.xlu0 %761  ;;  %v756_v58 = vadd.f32 %v752_v47, %v698_v50  ;;  %v757_v59 = vadd.f32 %v753_v48, %v699_v51 }
 0x15a   : > { %v800_v52 = vmul.f32 %v787_v36, %v762_v49  ;;  %v801_v53 = vmul.f32 %v791_v40, %v762_v49  ;;  %v802_v54 = vmul.f32 %v795_v41, %v762_v49  ;;  %v803_v55 = vmul.f32 %v799_v42, %v762_v49 }
 0x15c   : > { %v808_v60 = vcombine.low %v800_v52, %v801_v53  ;;  %v809_v61 = vcombine.low %v802_v54, %v803_v55 }
 0x15e   : > { %v812_v62 = vadd.f32 %v808_v60, %v756_v58  ;;  %v813_v63 = vadd.f32 %v809_v61, %v757_v59 }
 0x160   : > { %v868_v2 = vadd.f32 %v864_v56, %v812_v62  ;;  %v869_v3 = vadd.f32 %v865_v57, %v813_v63 }
 0x162   : > { %v874_v5 = vmul.f32 %v873_v0, %v868_v2  ;;  %v875_v6 = vmul.f32 %v873_v0, %v869_v3 }
 0x164   : > { %v883_v13 = vmul.f32 %v882_v4, %v874_v5  ;;  %v884_v14 = vmul.f32 %v882_v4, %v875_v6 }
 0x166   : > { %v885_v15 = vadd.f32 %v883_v13, %v878_v9  ;;  %v886_v16 = vadd.f32 %v884_v14, %v879_v11 }
 0x168   : > { %887 = vst [vmem:[#allocation8] sm:$0x77] %v885_v15  ;;  %888 = vst [vmem:[#allocation8 + $0x8] sm:$0x77] %v886_v16 }
 0x169   : > { %1136 = shalt.err (!%p1133_p11)
}
 0x16a   : > { %s1137_s13 = scalar_lea.hbm %s1427_s8, 256 }
 0x16b   : > { %p1138_p12 = scmp.ne.s32.totalorder %s1427_s8, %s1137_s13  ;;  %p1143_p1 = scmp.lt.u32.totalorder %s1137_s13, %s1427_s8 }
 0x16d   : > { %p1139_p13 = pnand %p1138_p12, %p1384_p3 }
 0x16f   : > { %p1140_p0 = pneg %p1139_p13 }
 0x171   : > { %p1145_p2 = pnand %p1143_p1, %p1140_p0 }
 0x173   : > { %1148 = shalt.err (!%p1145_p2)
}
 0x174   : > { %1017 = dma.vmem_to_hbm [thread:$0]  (%p1384_p3), %s900_s24, 256, %s1427_s8, [#allocation5]  }
 0x175   : > { %1170 = dma.done.wait (%p1384_p3), [#allocation5], 256  }
 0x176   : > { %1172 = vsyncadd (%p1384_p3), [#allocation5], 4294967040 }
 0x177 PF: > { %s21_s29 = sadd.s32 1, %s1183_s29   ;;  %s1432_s27 = smov %s1179_s28 }
 0x178   : > { %p18_p8 = scmp.ge.s32.totalorder %s21_s29, 12   ;;  %s1433_s28 = smov %s1435_s9 }
 0x17a   :  { %20 = sbr.rel (!%p18_p8) target bundleno = 4 (0x4), region = 98 }
 0x181   :  { %912 = vsyncpa [#allocation4], 1 }
 0x182   :  { %914 = vsyncpa [#allocation4 + $0x1], 1 }
 0x183   :  { %915 = vsyncpa [#allocation5], 1 }
 0x184   :  { %917 = vsyncpa [#allocation5 + $0x1], 1 }
 0x185   :  { %918 = vsyncpa [#allocation6], 1 }
 0x186   :  { %920 = vsyncpa [#allocation6 + $0x1], 1 }

</bundles_post_ra>
